<compile_context>
chip_gen: v5e
topology: v5e:2x2
jax: 0.10.0
libtpu: 0.0.40
codegen_flags: <defaults>
</compile_context>

<pallas_src>
import functools

import jax
import jax.numpy as jnp
from jax.experimental import pallas as pl
from jax.experimental.pallas import tpu as pltpu


# --------------------------------------------------------------------------
# tiling helpers / compiler params
# --------------------------------------------------------------------------
def _default_t_block(T):
    for cand in (T // 2, T):
        if cand >= 8 and cand % 8 == 0 and T % cand == 0:
            return cand
    return T


def _default_d_block(D):
    # Cap at 256 so realistic D (>=512) gets >=2 grid steps (megacore / v7x)
    # and the double-buffered x/out blocks stay inside v7x's 64 MiB VMEM.
    for cand in (256, 128, 64, 32, 16, 8):
        if D % cand == 0:
            return cand
    return D


def _vmem_cap_bytes():
    # TODO(synk): on v7x (64 MiB physical VMEM) prefer lowering d_block/t_block
    # rather than raising the limit; this cap only avoids over-requesting.
    try:
        cap = getattr(pltpu.get_tpu_info(), "vmem_capacity_bytes", None)
        if cap:
            return int(0.75 * cap)
    except Exception:
        pass
    return 96 << 20


def _compiler_params(semantics, block_bytes):
    # Double-buffered pipeline blocks + headroom; only raise the scoped VMEM
    # limit when the default 32 MiB would be exceeded (v6e/v5e benefit from
    # large tiles, v7x keeps the small default).
    est = int(2 * block_bytes) + (2 << 20)
    kwargs = dict(dimension_semantics=semantics)
    if est > (32 << 20):
        kwargs["vmem_limit_bytes"] = min(est, _vmem_cap_bytes())
    return pltpu.CompilerParams(**kwargs)


# --------------------------------------------------------------------------
# Kernel 1: RPENet
#   R[b, t, s, :] = Wo @ silu(Wt@temb[b,t] + Wd@feat(d_ts)) + bo
# Output layout is the dense (B, T, S, C) bf16 slab (C = H * head_dim), which
# is exactly the PyTorch layout before the per-head .view, so the producer
# store is one lane-wide dense write and the apply kernel slices heads from C.
# --------------------------------------------------------------------------
def _rpenet_kernel(pd_ref, temb_ref, wd_ref, bd_ref, wt_ref, bt_ref,
                   wo_ref, bo_ref, r_ref):
    Tt, S = pd_ref.shape[1], pd_ref.shape[2]
    C = wo_ref.shape[1]

    # time-embedding projection for the whole t-block: one bf16 MXU matmul,
    # f32 accumulation (weights pre-cast to bf16 in the wrapper).
    tproj = jnp.dot(temb_ref[0].astype(jnp.bfloat16), wt_ref[...],
                    preferred_element_type=jnp.float32) + bt_ref[...]   # (Tt, C)

    pd = pd_ref[0]                                                      # (Tt, S)
    # distance features: [log(1+max(d,0)), log(1+max(-d,0)), (d==0)]
    # NOTE: exact (pd == 0.0) is safe because distances are integer-valued
    # floats (as in the PyTorch reference).
    f_pos = jnp.log(1.0 + jnp.maximum(pd, 0.0))
    f_neg = jnp.log(1.0 + jnp.maximum(-pd, 0.0))
    f_zero = (pd == 0.0).astype(jnp.float32)

    w0 = wd_ref[0]                                                      # (C,)
    w1 = wd_ref[1]
    w2 = wd_ref[2]
    bd = bd_ref[0]                                                      # (C,)
    wo = wo_ref[...]                                                    # (C, C) bf16
    bo = bo_ref[...]                                                    # (1, C)

    # Chunk the (t, s) rows so the (rows, C) f32 temporaries stay within the
    # vreg budget (perf review: avoid spilling the full (T, S, C) emb/h).
    tc = max(1, min(Tt, 64 // max(S, 1)))
    while Tt % tc:
        tc -= 1
    for t0 in range(0, Tt, tc):
        sl = slice(t0, t0 + tc)
        emb = (tproj[sl][:, None, :]
               + f_pos[sl][:, :, None] * w0[None, None, :]
               + f_neg[sl][:, :, None] * w1[None, None, :]
               + f_zero[sl][:, :, None] * w2[None, None, :]
               + bd[None, None, :])                                     # (tc,S,C)
        hemb = emb * jax.nn.sigmoid(emb)                                # SiLU, f32
        h2 = hemb.reshape(tc * S, C).astype(jnp.bfloat16)
        # single C-wide out projection (no per-head loop): full MXU N-dim use.
        r = jnp.dot(h2, wo, preferred_element_type=jnp.float32) + bo    # (tc*S,C)
        r_ref[0, sl] = r.reshape(tc, S, C).astype(r_ref.dtype)          # dense store


def rpenet_forward(pd, temb, params, *, t_block=None):
    """pd: (B, T, S) f32, temb: (B, T, E) f32 -> R: (B, T, S, C) bf16."""
    B, T, S = pd.shape
    E = temb.shape[-1]
    wd, bd, wt_bf16, bt, wo_bf16, bo = params
    C = wo_bf16.shape[0]
    if t_block is None:
        t_block = _default_t_block(T)
    assert T % t_block == 0 and (t_block == T or t_block % 8 == 0), (
        "t_block must divide T and be a multiple of 8 (or equal T)")

    block_bytes = (t_block * S * 4 + t_block * E * 4
                   + 4 * C * 4 + E * C * 2 + C * C * 2
                   + t_block * S * C * 2)
    return pl.pallas_call(
        _rpenet_kernel,
        out_shape=jax.ShapeDtypeStruct((B, T, S, C), jnp.bfloat16),
        grid_spec=pltpu.PrefetchScalarGridSpec(
            num_scalar_prefetch=0,
            grid=(B, T // t_block),
            in_specs=[
                pl.BlockSpec((1, t_block, S), lambda b, ti: (b, ti, 0)),   # pd
                pl.BlockSpec((1, t_block, E), lambda b, ti: (b, ti, 0)),   # temb
                pl.BlockSpec((3, C), lambda b, ti: (0, 0)),                # Wd^T
                pl.BlockSpec((1, C), lambda b, ti: (0, 0)),                # bd
                pl.BlockSpec((E, C), lambda b, ti: (0, 0)),                # Wt^T bf16
                pl.BlockSpec((1, C), lambda b, ti: (0, 0)),                # bt
                pl.BlockSpec((C, C), lambda b, ti: (0, 0)),                # Wo^T bf16
                pl.BlockSpec((1, C), lambda b, ti: (0, 0)),                # bo
            ],
            out_specs=pl.BlockSpec((1, t_block, S, C),
                                   lambda b, ti: (b, ti, 0, 0)),
        ),
        compiler_params=_compiler_params(("parallel", "parallel"), block_bytes),
    )(pd, temb, wd, bd, wt_bf16, bt, wo_bf16, bo)


# --------------------------------------------------------------------------
# Kernel 2: apply R to qk / attn.
#   mode "qk":  out[b,d,h,t,s] = sum_f x[b,d,h,t,f] * R[b,t,s,h*F+f]
#   mode "v" :  out[b,d,h,t,f] = sum_s x[b,d,h,t,s] * R[b,t,s,h*F+f]
# Grid = (B, D_tiles); each step streams a lane-flattened (d_block, H*T*K)
# x slab and the whole per-batch R (small, no D factor), and writes a single
# lane-flattened (d_block, H*T*N) output block -> dense HBM DMAs both ways.
# --------------------------------------------------------------------------
def _rpe_apply_kernel(mode, H, T, K, N, F, x_ref, r_ref, o_ref):
    # x_ref: (1, d_block, H*T*K)      input dtype (f32 or bf16)
    # r_ref: (1, T, S, C) bf16        C = H*F
    # o_ref: (1, d_block, H*T*N)      out dtype
    rhs_cdim = 1 if mode == "qk" else 0        # contract F ("qk") or S ("v")
    for t in range(T):                         # static unroll, T is small
        rt = r_ref[0, t]                       # (S, C) bf16, dense lane-wide load
        for h in range(H):
            # per-(h,t) ref load keeps the live set to one (d_block, K) tile
            # (no full-block materialisation, no full-block astype).
            xt = x_ref[0, :, pl.ds((h * T + t) * K, K)].astype(jnp.bfloat16)
            rht = rt[:, h * F:(h + 1) * F]     # (S, F) head slice (small value)
            ot = jax.lax.dot_general(
                xt, rht, (((1,), (rhs_cdim,)), ((), ())),
                preferred_element_type=jnp.float32)          # (d_block, N)
            # TODO(synk): upgrade to one (d_block, T*N) slab store per head
            # (needs unaligned lane-dim concat); the HBM write-back is already
            # a single dense DMA per grid step with this layout.
            o_ref[0, :, pl.ds((h * T + t) * N, N)] = ot.astype(o_ref.dtype)


def rpe_apply(x, R, mode, *, d_block=None, out_dtype=jnp.float32):
    """x: (B, D, H, T, K), R: (B, T, S, C) bf16 -> (B, D, H, T, S|F)."""
    B, D, H, T, K = x.shape
    _, Tr, S, C = R.shape
    assert Tr == T and C % H == 0
    F = C // H
    N = S if mode == "qk" else F
    assert K == (F if mode == "qk" else S)
    if d_block is None:
        d_block = _default_d_block(D)
    assert D % d_block == 0 and (d_block == D or d_block % 8 == 0), (
        "d_block must divide D and be a multiple of 8 (or equal D)")

    x_flat = x.reshape(B, D, H * T * K)        # free (contiguous) reshape
    kernel = functools.partial(_rpe_apply_kernel, mode, H, T, K, N, F)
    block_bytes = (d_block * H * T * K * x.dtype.itemsize
                   + T * S * C * R.dtype.itemsize
                   + d_block * H * T * N * jnp.dtype(out_dtype).itemsize)
    out_flat = pl.pallas_call(
        kernel,
        out_shape=jax.ShapeDtypeStruct((B, D, H * T * N), out_dtype),
        grid_spec=pltpu.PrefetchScalarGridSpec(
            num_scalar_prefetch=0,
            grid=(B, D // d_block),
            in_specs=[
                pl.BlockSpec((1, d_block, H * T * K), lambda b, d: (b, d, 0)),
                pl.BlockSpec((1, T, S, C), lambda b, d: (b, 0, 0, 0)),
            ],
            out_specs=pl.BlockSpec((1, d_block, H * T * N),
                                   lambda b, d: (b, d, 0)),
        ),
        compiler_params=_compiler_params(("parallel", "parallel"), block_bytes),
    )(x_flat, R)
    return out_flat.reshape(B, D, H, T, N)     # free (contiguous) reshape


# --------------------------------------------------------------------------
# RPE module (JAX/Pallas port)
# --------------------------------------------------------------------------
class RPE:
    def __init__(self, channels, num_heads, time_embed_dim, use_rpe_net=True,
                 key=None, out_dtype=jnp.float32, d_block=None, t_block=None):
        self.channels = channels
        self.num_heads = num_heads
        self.head_dim = channels // num_heads
        self.use_rpe_net = use_rpe_net
        self.beta = 1
        # knobs plumbed through the module API (perf review): out_dtype can be
        # set to jnp.bfloat16 to halve write traffic where downstream allows.
        self.out_dtype = out_dtype
        self.d_block = d_block
        self.t_block = t_block
        key = jax.random.PRNGKey(0) if key is None else key
        ks = jax.random.split(key, 7)
        C, E = channels, time_embed_dim
        if use_rpe_net:
            # NOTE: the reference zero-initialises `out` (and the lookup
            # table), which would make every output exactly 0.  We use small
            # deterministic random values so the kernels exercise real compute.
            # Weights are stored already transposed for right-multiplication.
            self.wd = 0.1 * jax.random.normal(ks[0], (3, C), jnp.float32)
            self.bd = 0.1 * jax.random.normal(ks[1], (1, C), jnp.float32)
            self.wt = 0.1 * jax.random.normal(ks[2], (E, C), jnp.float32)
            self.bt = 0.1 * jax.random.normal(ks[3], (1, C), jnp.float32)
            self.wo = 0.1 * jax.random.normal(ks[4], (C, C), jnp.float32)
            self.bo = 0.1 * jax.random.normal(ks[5], (1, C), jnp.float32)
            # hoisted bf16 casts of the MXU operands (done once, not per step)
            self.wt_bf16 = self.wt.astype(jnp.bfloat16)
            self.wo_bf16 = self.wo.astype(jnp.bfloat16)
        else:
            self.lookup_table_weight = 0.1 * jax.random.normal(
                ks[6], (2 * self.beta + 1, num_heads, self.head_dim),
                jnp.float32)

    def get_R(self, pairwise_distances, temb):
        """Returns R as a dense (B, T, S, C) bf16 slab.  Compute once per step
        and pass to both the 'qk' and the 'v' call to avoid recompute."""
        if self.use_rpe_net:
            return rpenet_forward(
                pairwise_distances.astype(jnp.float32), temb,
                (self.wd, self.bd, self.wt_bf16, self.bt,
                 self.wo_bf16, self.bo),
                t_block=self.t_block)
        # TODO(synk): lookup-table path is a pure gather (no matmul hot path)
        # -> kept as plain-JAX indexing glue, reshaped to the apply layout.
        Rl = self.lookup_table_weight[pairwise_distances.astype(jnp.int32)]
        B, T, S = pairwise_distances.shape
        return Rl.reshape(B, T, S, -1).astype(jnp.bfloat16)

    def __call__(self, x, pairwise_distances, temb, mode, R=None):
        if R is None:
            R = self.get_R(pairwise_distances, temb)
        if mode in ("qk", "v"):
            return rpe_apply(x, R, mode, d_block=self.d_block,
                             out_dtype=self.out_dtype)
        raise ValueError(f"Unexpected RPE attention mode: {mode}")

    def forward_qk(self, qk, pairwise_distances, temb, R=None):
        return self(qk, pairwise_distances, temb, "qk", R=R)

    def forward_v(self, attn, pairwise_distances, temb, R=None):
        return self(attn, pairwise_distances, temb, "v", R=R)


# --------------------------------------------------------------------------
# pure-JAX f32 reference (for correctness check only)
# --------------------------------------------------------------------------
def _rpenet_ref(pd, temb, wd, bd, wt, bt, wo, bo, H, F):
    de = jnp.stack([jnp.log(1.0 + jnp.maximum(pd, 0.0)),
                    jnp.log(1.0 + jnp.maximum(-pd, 0.0)),
                    (pd == 0.0).astype(jnp.float32)], axis=-1)     # (B,T,S,3)
    tproj = temb @ wt + bt[0]                                      # (B,T,C)
    emb = tproj[:, :, None, :] + (de @ wd + bd[0])                 # (B,T,S,C)
    h = emb * jax.nn.sigmoid(emb)
    r = h @ wo + bo[0]
    B, T, S = pd.shape
    return r.reshape(B, T, S, H, F)


if __name__ == "__main__":
    # batch, frames, spatial tokens, heads, channels, temb dim
    B, T, D, H, C, E = 2, 8, 16, 4, 32, 32
    F = C // H

    key = jax.random.PRNGKey(0)
    k_qk, k_attn, k_temb, k_param = jax.random.split(key, 4)

    idx = jnp.arange(T)
    pairwise_distances = jnp.broadcast_to(
        (idx[:, None] - idx[None, :]).astype(jnp.float32), (B, T, T))
    temb = jax.random.normal(k_temb, (B, T, E), jnp.float32)
    qk = jax.random.normal(k_qk, (B, D, H, T, F), jnp.float32)
    attn = jax.random.normal(k_attn, (B, D, H, T, T), jnp.float32)

    rpe = RPE(C, H, E, use_rpe_net=True, key=k_param)

    # compute R once and reuse it for both passes
    R = jax.block_until_ready(rpe.get_R(pairwise_distances, temb))
    out_qk = jax.block_until_ready(
        rpe(qk, pairwise_distances, temb, mode="qk", R=R))
    out_v = jax.block_until_ready(
        rpe(attn, pairwise_distances, temb, mode="v", R=R))

    # verify against a pure-JAX f32 reference of the PyTorch forward
    # (kernels feed the MXU bf16 and store R bf16, hence relaxed tolerance).
    R_ref = _rpenet_ref(pairwise_distances, temb, rpe.wd, rpe.bd, rpe.wt,
                        rpe.bt, rpe.wo, rpe.bo, H, F)
    ref_qk = jnp.einsum("bdhtf,btshf->bdhts", qk, R_ref)
    ref_v = jnp.einsum("bdhts,btshf->bdhtf", attn, R_ref)

    assert out_qk.shape == (B, D, H, T, T)
    assert out_v.shape == (B, D, H, T, F)
    assert jnp.allclose(out_qk, ref_qk, atol=2e-2, rtol=2e-2)
    assert jnp.allclose(out_v, ref_v, atol=2e-2, rtol=2e-2)
    print("KERNEL_OK")
</pallas_src>

<mosaic_0001>
module attributes {stable_mosaic.version = 11 : i64} {
  func.func @_rpenet_kernel(%arg0: i32, %arg1: i32, %arg2: memref<1x8x8xf32, #tpu.memory_space<vmem>>, %arg3: memref<1x8x32xf32, #tpu.memory_space<vmem>>, %arg4: memref<3x32xf32, #tpu.memory_space<vmem>>, %arg5: memref<1x32xf32, #tpu.memory_space<vmem>>, %arg6: memref<32x32xbf16, #tpu.memory_space<vmem>>, %arg7: memref<1x32xf32, #tpu.memory_space<vmem>>, %arg8: memref<32x32xbf16, #tpu.memory_space<vmem>>, %arg9: memref<1x32xf32, #tpu.memory_space<vmem>>, %arg10: memref<1x8x8x32xbf16, #tpu.memory_space<vmem>>) attributes {dimension_semantics = [#tpu.dimension_semantics<parallel>, #tpu.dimension_semantics<parallel>], iteration_bounds = array<i64: 2, 1>, scalar_prefetch = 0 : i64, scratch_operands = 0 : i64, tpu.core_type = #tpu.core_type<tc>, window_params = [{transform_indices = @transform_0, window_bounds = array<i64: 1, 8, 8>}, {transform_indices = @transform_1, window_bounds = array<i64: 1, 8, 32>}, {pipeline_mode = #tpu.pipeline_mode<synchronous>, transform_indices = @transform_2, window_bounds = array<i64: 3, 32>}, {pipeline_mode = #tpu.pipeline_mode<synchronous>, transform_indices = @transform_3, window_bounds = array<i64: 1, 32>}, {pipeline_mode = #tpu.pipeline_mode<synchronous>, transform_indices = @transform_4, window_bounds = array<i64: 32, 32>}, {pipeline_mode = #tpu.pipeline_mode<synchronous>, transform_indices = @transform_5, window_bounds = array<i64: 1, 32>}, {pipeline_mode = #tpu.pipeline_mode<synchronous>, transform_indices = @transform_6, window_bounds = array<i64: 32, 32>}, {pipeline_mode = #tpu.pipeline_mode<synchronous>, transform_indices = @transform_7, window_bounds = array<i64: 1, 32>}, {transform_indices = @transform_8, window_bounds = array<i64: 1, 8, 8, 32>}]} {
    %c0 = arith.constant 0 : index
    %c0_0 = arith.constant 0 : index
    %c0_1 = arith.constant 0 : index
    %0 = vector.load %arg3[%c0, %c0_0, %c0_1] : memref<1x8x32xf32, #tpu.memory_space<vmem>>, vector<1x8x32xf32>
    %1 = vector.shape_cast %0 : vector<1x8x32xf32> to vector<8x32xf32>
    %2 = arith.truncf %1 : vector<8x32xf32> to vector<8x32xbf16>
    %c0_2 = arith.constant 0 : index
    %c0_3 = arith.constant 0 : index
    %3 = vector.load %arg6[%c0_2, %c0_3] : memref<32x32xbf16, #tpu.memory_space<vmem>>, vector<32x32xbf16>
    %cst = arith.constant dense<0.000000e+00> : vector<8x32xf32>
    %4 = tpu.matmul %2, %3, %cst {dimension_numbers = #tpu.dot_dimension_numbers<[1], [0], [0], [1], [0, 0, 1, 1], [], []>} : vector<8x32xbf16>, vector<32x32xbf16>, vector<8x32xf32> -> vector<8x32xf32>
    %c0_4 = arith.constant 0 : index
    %c0_5 = arith.constant 0 : index
    %5 = vector.load %arg7[%c0_4, %c0_5] : memref<1x32xf32, #tpu.memory_space<vmem>>, vector<1x32xf32>
    %6 = vector.broadcast %5 : vector<1x32xf32> to vector<8x32xf32>
    %7 = arith.addf %4, %6 : vector<8x32xf32>
    %c0_6 = arith.constant 0 : index
    %c0_7 = arith.constant 0 : index
    %c0_8 = arith.constant 0 : index
    %8 = vector.load %arg2[%c0_6, %c0_7, %c0_8] : memref<1x8x8xf32, #tpu.memory_space<vmem>>, vector<1x8x8xf32>
    %9 = vector.shape_cast %8 : vector<1x8x8xf32> to vector<8x8xf32>
    %cst_9 = arith.constant 0.000000e+00 : f32
    %10 = vector.broadcast %cst_9 : f32 to vector<8x8xf32>
    %11 = arith.maximumf %9, %10 : vector<8x8xf32>
    %cst_10 = arith.constant 1.000000e+00 : f32
    %12 = vector.broadcast %cst_10 : f32 to vector<8x8xf32>
    %13 = arith.addf %12, %11 : vector<8x8xf32>
    %14 = math.log %13 : vector<8x8xf32>
    %cst_11 = arith.constant 0.000000e+00 : f32
    %15 = vector.broadcast %cst_11 : f32 to vector<8x8xf32>
    %16 = arith.subf %15, %9 : vector<8x8xf32>
    %cst_12 = arith.constant 0.000000e+00 : f32
    %17 = vector.broadcast %cst_12 : f32 to vector<8x8xf32>
    %18 = arith.maximumf %16, %17 : vector<8x8xf32>
    %cst_13 = arith.constant 1.000000e+00 : f32
    %19 = vector.broadcast %cst_13 : f32 to vector<8x8xf32>
    %20 = arith.addf %19, %18 : vector<8x8xf32>
    %21 = math.log %20 : vector<8x8xf32>
    %cst_14 = arith.constant 0.000000e+00 : f32
    %22 = vector.broadcast %cst_14 : f32 to vector<8x8xf32>
    %23 = arith.cmpf oeq, %9, %22 : vector<8x8xf32>
    %24 = arith.extui %23 : vector<8x8xi1> to vector<8x8xi32>
    %25 = arith.sitofp %24 : vector<8x8xi32> to vector<8x8xf32>
    %c0_15 = arith.constant 0 : index
    %c0_16 = arith.constant 0 : index
    %26 = vector.load %arg4[%c0_15, %c0_16] : memref<3x32xf32, #tpu.memory_space<vmem>>, vector<1x32xf32>
    %27 = vector.shape_cast %26 : vector<1x32xf32> to vector<32xf32>
    %c1 = arith.constant 1 : index
    %c0_17 = arith.constant 0 : index
    %28 = vector.load %arg4[%c1, %c0_17] : memref<3x32xf32, #tpu.memory_space<vmem>>, vector<1x32xf32>
    %29 = vector.shape_cast %28 : vector<1x32xf32> to vector<32xf32>
    %c2 = arith.constant 2 : index
    %c0_18 = arith.constant 0 : index
    %30 = vector.load %arg4[%c2, %c0_18] : memref<3x32xf32, #tpu.memory_space<vmem>>, vector<1x32xf32>
    %31 = vector.shape_cast %30 : vector<1x32xf32> to vector<32xf32>
    %c0_19 = arith.constant 0 : index
    %c0_20 = arith.constant 0 : index
    %32 = vector.load %arg5[%c0_19, %c0_20] : memref<1x32xf32, #tpu.memory_space<vmem>>, vector<1x32xf32>
    %33 = vector.shape_cast %32 : vector<1x32xf32> to vector<32xf32>
    %c0_21 = arith.constant 0 : index
    %c0_22 = arith.constant 0 : index
    %34 = vector.load %arg8[%c0_21, %c0_22] : memref<32x32xbf16, #tpu.memory_space<vmem>>, vector<32x32xbf16>
    %c0_23 = arith.constant 0 : index
    %c0_24 = arith.constant 0 : index
    %35 = vector.load %arg9[%c0_23, %c0_24] : memref<1x32xf32, #tpu.memory_space<vmem>>, vector<1x32xf32>
    %36 = vector.shape_cast %7 : vector<8x32xf32> to vector<8x1x32xf32>
    %37 = vector.shape_cast %14 : vector<8x8xf32> to vector<8x8x1xf32>
    %38 = vector.shape_cast %27 : vector<32xf32> to vector<1x1x32xf32>
    %39 = vector.broadcast %37 : vector<8x8x1xf32> to vector<8x8x32xf32>
    %40 = vector.broadcast %38 : vector<1x1x32xf32> to vector<8x8x32xf32>
    %41 = arith.mulf %39, %40 : vector<8x8x32xf32>
    %42 = vector.broadcast %36 : vector<8x1x32xf32> to vector<8x8x32xf32>
    %43 = arith.addf %42, %41 : vector<8x8x32xf32>
    %44 = vector.shape_cast %21 : vector<8x8xf32> to vector<8x8x1xf32>
    %45 = vector.shape_cast %29 : vector<32xf32> to vector<1x1x32xf32>
    %46 = vector.broadcast %44 : vector<8x8x1xf32> to vector<8x8x32xf32>
    %47 = vector.broadcast %45 : vector<1x1x32xf32> to vector<8x8x32xf32>
    %48 = arith.mulf %46, %47 : vector<8x8x32xf32>
    %49 = arith.addf %43, %48 : vector<8x8x32xf32>
    %50 = vector.shape_cast %25 : vector<8x8xf32> to vector<8x8x1xf32>
    %51 = vector.shape_cast %31 : vector<32xf32> to vector<1x1x32xf32>
    %52 = vector.broadcast %50 : vector<8x8x1xf32> to vector<8x8x32xf32>
    %53 = vector.broadcast %51 : vector<1x1x32xf32> to vector<8x8x32xf32>
    %54 = arith.mulf %52, %53 : vector<8x8x32xf32>
    %55 = arith.addf %49, %54 : vector<8x8x32xf32>
    %56 = vector.shape_cast %33 : vector<32xf32> to vector<1x1x32xf32>
    %57 = vector.broadcast %56 : vector<1x1x32xf32> to vector<8x8x32xf32>
    %58 = arith.addf %55, %57 : vector<8x8x32xf32>
    %59 = arith.negf %58 : vector<8x8x32xf32>
    %60 = math.exp %59 : vector<8x8x32xf32>
    %cst_25 = arith.constant 1.000000e+00 : f32
    %61 = vector.broadcast %cst_25 : f32 to vector<8x8x32xf32>
    %62 = arith.addf %61, %60 : vector<8x8x32xf32>
    %63 = arith.divf %61, %62 : vector<8x8x32xf32>
    %64 = arith.mulf %58, %63 : vector<8x8x32xf32>
    %65 = vector.shape_cast %64 : vector<8x8x32xf32> to vector<64x32xf32>
    %66 = arith.truncf %65 : vector<64x32xf32> to vector<64x32xbf16>
    %cst_26 = arith.constant dense<0.000000e+00> : vector<64x32xf32>
    %67 = tpu.matmul %66, %34, %cst_26 {dimension_numbers = #tpu.dot_dimension_numbers<[1], [0], [0], [1], [0, 0, 1, 1], [], []>} : vector<64x32xbf16>, vector<32x32xbf16>, vector<64x32xf32> -> vector<64x32xf32>
    %68 = vector.broadcast %35 : vector<1x32xf32> to vector<64x32xf32>
    %69 = arith.addf %67, %68 : vector<64x32xf32>
    %70 = vector.shape_cast %69 : vector<64x32xf32> to vector<8x8x32xf32>
    %71 = arith.truncf %70 : vector<8x8x32xf32> to vector<8x8x32xbf16>
    %c0_27 = arith.constant 0 : index
    %c0_28 = arith.constant 0 : index
    %c0_29 = arith.constant 0 : index
    %c0_30 = arith.constant 0 : index
    %72 = vector.load %arg10[%c0_27, %c0_28, %c0_29, %c0_30] : memref<1x8x8x32xbf16, #tpu.memory_space<vmem>>, vector<1x8x8x32xbf16>
    %73 = vector.shape_cast %72 : vector<1x8x8x32xbf16> to vector<8x8x32xbf16>
    %74 = vector.shape_cast %71 : vector<8x8x32xbf16> to vector<1x8x8x32xbf16>
    tpu.vector_store %arg10[%c0_27, %c0_28, %c0_29, %c0_30], %74 {strides = array<i32>} : memref<1x8x8x32xbf16, #tpu.memory_space<vmem>>, vector<1x8x8x32xbf16>,
    return
  }
  func.func @transform_0(%arg0: i32, %arg1: i32) -> (i32, i32, i32) {
    %c0_i32 = arith.constant 0 : i32
    %c0_i32_0 = arith.constant 0 : i32
    return %arg0, %arg1, %c0_i32 : i32, i32, i32
  }
  func.func @transform_1(%arg0: i32, %arg1: i32) -> (i32, i32, i32) {
    %c0_i32 = arith.constant 0 : i32
    %c0_i32_0 = arith.constant 0 : i32
    return %arg0, %arg1, %c0_i32 : i32, i32, i32
  }
  func.func @transform_2(%arg0: i32, %arg1: i32) -> (i32, i32) {
    %c0_i32 = arith.constant 0 : i32
    %c0_i32_0 = arith.constant 0 : i32
    %c0_i32_1 = arith.constant 0 : i32
    return %c0_i32, %c0_i32_0 : i32, i32
  }
  func.func @transform_3(%arg0: i32, %arg1: i32) -> (i32, i32) {
    %c0_i32 = arith.constant 0 : i32
    %c0_i32_0 = arith.constant 0 : i32
    %c0_i32_1 = arith.constant 0 : i32
    return %c0_i32, %c0_i32_0 : i32, i32
  }
  func.func @transform_4(%arg0: i32, %arg1: i32) -> (i32, i32) {
    %c0_i32 = arith.constant 0 : i32
    %c0_i32_0 = arith.constant 0 : i32
    %c0_i32_1 = arith.constant 0 : i32
    return %c0_i32, %c0_i32_0 : i32, i32
  }
  func.func @transform_5(%arg0: i32, %arg1: i32) -> (i32, i32) {
    %c0_i32 = arith.constant 0 : i32
    %c0_i32_0 = arith.constant 0 : i32
    %c0_i32_1 = arith.constant 0 : i32
    return %c0_i32, %c0_i32_0 : i32, i32
  }
  func.func @transform_6(%arg0: i32, %arg1: i32) -> (i32, i32) {
    %c0_i32 = arith.constant 0 : i32
    %c0_i32_0 = arith.constant 0 : i32
    %c0_i32_1 = arith.constant 0 : i32
    return %c0_i32, %c0_i32_0 : i32, i32
  }
  func.func @transform_7(%arg0: i32, %arg1: i32) -> (i32, i32) {
    %c0_i32 = arith.constant 0 : i32
    %c0_i32_0 = arith.constant 0 : i32
    %c0_i32_1 = arith.constant 0 : i32
    return %c0_i32, %c0_i32_0 : i32, i32
  }
  func.func @transform_8(%arg0: i32, %arg1: i32) -> (i32, i32, i32, i32) {
    %c0_i32 = arith.constant 0 : i32
    %c0_i32_0 = arith.constant 0 : i32
    %c0_i32_1 = arith.constant 0 : i32
    return %arg0, %arg1, %c0_i32, %c0_i32_0 : i32, i32, i32, i32
  }
}

</mosaic_0001>

<bundles_post_ra>
// kernel: tpu_custom_call.1
= control target key start
LH: loop header
LB: loop body
LE: loop exit
PB: predicated region body
PF: predicated region fallthrough
CT: control target
= control target key end

     0   :  { %s2072_s0 = inlined_call_operand.hbm [shape: f32[2,8,8], index: 0, kind: input, shape index: {}]   ;;  %s2073_s1 = inlined_call_operand.hbm [shape: f32[2,8,32], index: 1, kind: input, shape index: {}]   ;;  %s2074_s2 = inlined_call_operand.hbm [shape: f32[3,32], index: 2, kind: input, shape index: {}]   ;;  %s2075_s3 = inlined_call_operand.vmem [shape: f32[1,32], index: 3, kind: input, shape index: {}]   ;;  %s2076_s4 = inlined_call_operand.hbm [shape: bf16[32,32], index: 4, kind: input, shape index: {}]   ;;  %s2077_s5 = inlined_call_operand.vmem [shape: f32[1,32], index: 5, kind: input, shape index: {}]   ;;  %s2078_s6 = inlined_call_operand.hbm [shape: bf16[32,32], index: 6, kind: input, shape index: {}]   ;;  %s2079_s7 = inlined_call_operand.vmem [shape: f32[1,32], index: 7, kind: input, shape index: {}]   ;;  %s2080_s8 = inlined_call_operand.hbm [shape: bf16[2,8,8,32], index: 8, kind: output, shape index: {}]  }
   0x1   :  { %2085 = sst [smem:[#allocation22_spill]] %s2074_s2 }
   0x2   :  { %2086 = sst [smem:[#allocation23_spill]] %s2076_s4 }
   0x3   :  { %2087 = sst [smem:[#allocation24_spill]] %s2078_s6 }
   0x4   :  { %13 = vsyncpa [#allocation3], 0 }
   0x5   :  { %15 = vsyncpa [#allocation3 + $0x1], 0 }
   0x6   :  { %16 = vsyncpa [#allocation6], 0 }
   0x7   :  { %18 = vsyncpa [#allocation6 + $0x1], 0 }
   0x8   :  { %19 = vsyncpa [#allocation9], 0 }
   0x9   :  { %20 = vsyncpa [#allocation4], 0 }
   0xa   :  { %22 = vsyncpa [#allocation4 + $0x1], 0  ;;  %s1667_s27 = smov 0   ;;  %s1669_s28 = smov 0  }
   0xb   :  { %s1671_s29 = smov 0   ;;  %s1673_s30 = smov 0  }
   0xc   :  { %s1675_s9 = smov 0   ;;  %s1677_s10 = smov 0  }
   0xd LB: > { %2088 = sst [smem:[#allocation17_spill]] %s1592_s27  ;;  %s1698_s11 = sadd.s32 4294967295, %s1612_s10   ;;  %s1612_s10 = sphi %s1677_s10, %s28_s10   ;;  %s1608_s9 = sphi %s1675_s9, %s2118_s9   ;;  %s1604_s30 = sphi %s1673_s30, %s2117_s30   ;;  %s1600_s29 = sphi %s1671_s29, %s2121_s29   ;;  %s1596_s28 = sphi %s1669_s28, %s2120_s28   ;;  %s1592_s27 = sphi %s1667_s27, %s2119_s27  }
   0xe   : > { %2089 = sst [smem:[#allocation18_spill]] %s1608_s9  ;;  %s1139_s12 = sadd.s32 4294967294, %s1612_s10  }
   0xf   : > { %p62_p0 = scmp.ne.s32.totalorder %s1596_s28, %s1592_s27  ;;  %p63_p1 = scmp.eq.s32.totalorder %s1698_s11, 0 }
  0x10   : > { %p242_p2 = scmp.eq.s32.totalorder %s1698_s11, 1  ;;  %p248_p3 = scmp.eq.s32.totalorder %s1139_s12, 1 }
  0x11   : > { %p1707_p4 = por %p63_p1, %p62_p0  ;;  %p1140_p5 = scmp.ge.s32.totalorder %s1612_s10, 1 }
  0x12   : > { %p1712_p6 = por %p248_p3, %p62_p0  ;;  %p255_p7 = scmp.lt.s32.totalorder %s1612_s10, 3 }
  0x13   : > { %s2093_s2 = sld [smem:[#allocation22_spill]]  ;;  %p1144_p9 = scmp.ge.s32.totalorder %s1612_s10, 2 }
  0x14   : > { %s2091_s14 = scalar_select %p1712_p6, 1, 0 }
  0x15   : > { %p1720_p8 = pnand %p1140_p5, %p255_p7  ;;  %s1614_s19 = smov [#allocation7]  }
  0x16   : > { %2092 = sst [smem:[#allocation19_spill]] %s2091_s14  ;;  %s269_s20 = sshll.u32 %s1614_s19, 4  ;;  %s270_s20 = int_to_ptr.vmem [resolvable:$true] %s269_s20 }
  0x17   : > { %p1218_p10 = pneg %p1720_p8  ;;  %s2095_s4 = sld [smem:[#allocation23_spill]] }
  0x18   : > { %s1615_s25 = smov [#allocation8]   ;;  %s1616_s12 = smov 64  }
  0x19   : > { %s267_s17 = sshll.u32 %s2093_s2, 4  ;;  %p1732_p11 = pnand %p1218_p10, %p63_p1  ;;  %s268_s17 = int_to_ptr.hbm [resolvable:$true] %s267_s17 }
  0x1a   : > { %s283_s26 = sshll.u32 %s1615_s25, 4  ;;  %s1617_s15 = smov 4   ;;  %s284_s26 = int_to_ptr.vmem [resolvable:$true] %s283_s26 }
  0x1b   : > { %1221 = dma.hbm_to_vmem [thread:$0]  (!%p1732_p11), %s268_s17, 64, %s270_s20, [#allocation6]  }
  0x1c   : > { %s2097_s6 = sld [smem:[#allocation24_spill]]  ;;  %s1618_s22 = smov [#allocation10]  }
  0x1d   : > { %s281_s23 = sshll.u32 %s2095_s4, 4  ;;  %s300_s2 = sshll.u32 %s1618_s22, 4  ;;  %s282_s23 = int_to_ptr.hbm [resolvable:$true] %s281_s23  ;;  %s301_s2 = int_to_ptr.vmem [resolvable:$true] %s300_s2 }
  0x1e   : > { %1224 = dma.hbm_to_vmem [thread:$0]  (!%p1732_p11), %s282_s23, 256, %s284_s26, [#allocation9], %s1616_s12, %s1616_s12, %s1617_s15  }
  0x1f   : > { %s49_s17 = sadd.s32 1, %s1600_s29  ;;  %s40_s20 = sadd.s32 1, %s1608_s9 }
  0x20   : > { %p56_p12 = scmp.ne.s32.totalorder %s1600_s29, %s1596_s28  ;;  %p42_p13 = scmp.ge.s32.totalorder %s40_s20, 2 }
  0x21   : > { %p57_p0 = scmp.eq.s32.totalorder %s1612_s10, 0  ;;  %p1242_p5 = scmp.lt.s32.totalorder %s1612_s10, 2 }
  0x22   : > { %s298_s21 = sshll.u32 %s2097_s6, 4  ;;  %p1752_p3 = por %p242_p2, %p56_p12  ;;  %s299_s21 = int_to_ptr.hbm [resolvable:$true] %s298_s21 }
  0x23   : > { %1227 = dma.hbm_to_vmem [thread:$0]  (!%p1732_p11), %s299_s21, 256, %s301_s2, [#allocation9], %s1616_s12, %s1616_s12, %s1617_s15  }
  0x24   : > { %s2123_s20 = smov (%p42_p13, %s40_s20), 0  ;;  %p1759_p7 = por %p57_p0, %p56_p12 }
  0x25   : > { %2099 = sst [smem:[#allocation20_spill]] %s2123_s20  ;;  %s317_s2 = sand.u32 1, %s1600_s29  }
  0x26   : > { %s44_s25 = ssub.s32 %s1608_s9, %s2123_s20  ;;  %s1145_s26 = sshll.u32 %s317_s2, 3 }
  0x27   : > { %p47_p10 = scmp.eq.s32.totalorder %s44_s25, 0  ;;  %s1146_s12 = sshll.u32 %s1608_s9, 3 }
  0x28   : > { %s326_s21 = scalar_lea.hbm %s2072_s0, %s1146_s12  ;;  %s321_s22 = scalar_lea.vmem [#allocation2], %s1145_s26 }
  0x29   : > { %s1768_s15 = scalar_select %p47_p10, %s1600_s29, %s49_s17  }
  0x2a   : > { %s330_s4 = sshll.u32 %s321_s22, 4  ;;  %s328_s6 = sshll.u32 %s326_s21, 4  ;;  %s331_s4 = int_to_ptr.vmem [resolvable:$true] %s330_s4  ;;  %s329_s6 = int_to_ptr.hbm [resolvable:$true] %s328_s6 }
  0x2b   : > { %2101 = sst [smem:[#allocation21_spill]] %s1768_s15  ;;  %p1229_p2 = pnand %p1242_p5, %p1759_p7 }
  0x2c   : > { %s346_s25 = scalar_lea.hbm %s2073_s1, %s1146_s12  ;;  %s337_s20 = sand.u32 1, %s1612_s10  }
  0x2d   : > { %s318_s9 = scalar_lea.sflag [#allocation3], %s317_s2  ;;  %s348_s17 = sshll.u32 %s346_s25, 4  ;;  %s349_s17 = int_to_ptr.hbm [resolvable:$true] %s348_s17 }
  0x2e   : > { %1231 = dma.hbm_to_vmem [thread:$0]  (!%p1229_p2), %s329_s6, 128, %s331_s4, %s318_s9  }
  0x2f   : > { %s341_s15 = scalar_lea.vmem [#allocation5], %s1145_s26  ;;  %s338_s19 = scalar_lea.sflag [#allocation6], %s337_s20 }
  0x30   : > { %s350_s16 = sshll.u32 %s341_s15, 4  ;;  %359 = sbr.rel (%p1720_p8) target bundleno = 424 (0x1a8), region = 52  ;;  %s351_s16 = int_to_ptr.vmem [resolvable:$true] %s350_s16 }
  0x31   : > { %1234 = dma.hbm_to_vmem [thread:$0]  (!%p1229_p2), %s349_s17, 128, %s351_s16, %s338_s19  }
  0x32   : > { %s1784_s24 = sand.u32 (!%p1720_p8), 1, %s1596_s28  }
  0x33   : > { %s1150_s27 = sshll.u32 (!%p1720_p8), %s1784_s24, 3  ;;  %s362_s14 = scalar_lea.sflag (!%p1720_p8), [#allocation3], %s1784_s24 }
  0x34   : > { %s365_s2 = scalar_lea.vmem (!%p1720_p8), [#allocation2], %s1150_s27 }
  0x35   : > { %1571 = dma.done.wait (%p1707_p4), %s362_s14, 128  }
  0x36   : > { %1573 = vsyncadd (%p1707_p4), %s362_s14, 4294967168  ;;  %s371_s4 = sand.u32 1, %s1698_s11   ;;  %s375_s9 = scalar_lea.vmem [#allocation5], %s1150_s27 }
  0x37   : > { %s372_s6 = scalar_lea.sflag [#allocation6], %s371_s4 }
  0x38   : > { %1575 = dma.done.wait (%p1707_p4), %s372_s6, 128  }
  0x39   : > { %1577 = vsyncadd (%p1707_p4), %s372_s6, 4294967168 }
  0x3a   : > { %1579 = dma.done.wait (%p63_p1), [#allocation6], 64  }
  0x3b   : > { %1581 = vsyncadd (%p63_p1), [#allocation6], 4294967232 }
  0x3c   : > { %1583 = dma.done.wait (%p63_p1), [#allocation9], 512  }
  0x3d   : > { %1585 = vsyncadd (%p63_p1), [#allocation9], 4294966784  ;;  %v501_v0 = vlaneseq  ;;  %v1192_v2 = vld [vmem:[#allocation8 + $0x8] sm:$0xff]  ;;  %v1191_v4 = vld [vmem:[#allocation8] sm:$0xff]  ;;  %v1619_v7 = vmov 0.0   ;;  %vm453_vm1 = vcmask 261120  }
  0x3e   : > { %v470_v3 = vld [vmem:[%s365_s2] sm:$0xff]  ;;  %463 = vmatpush.bf16.msra.mxu0 %v1192_v2  ;;  %v431_v9 = vld [vmem:[%s375_s9] sm:$0xff]  ;;  %s1155_s15 = sshll.u32 %s1784_s24, 5  ;;  %s1195_s22 = sshll.u32 %s1604_s30, 5 }
  0x3f   : > { %v502_v1 = vshrl.u32 %v501_v0, 7  ;;  %vm480_vm0 = vcmp.eq.f32.partialorder %v470_v3, 0.0  ;;  %v471_v5 = vmax.f32 %v470_v3, 0.0  ;;  %v475_v6 = vsub.f32 0.0, %v470_v3  ;;  %v1329_v52 = vld [vmem:[%s2077_s5] ss:$0 sm:$0xff]  ;;  %s997_s16 = scalar_lea.hbm %s2080_s8, %s1195_s22 }
  0x40   : > { %v1165_v8 = vsel %vm480_vm0, 1.0, %v1619_v7  ;;  %v432_v16 = vpack.c.bf16 %v431_v9, %v431_v9  ;;  %v1813_v54 = vld [vmem:[#allocation7] ss:$0 sm:$0xff]  ;;  %v1817_v56 = vld [vmem:[#allocation7 + $0x1] ss:$0 sm:$0xff]  ;;  %s2015_s21 = scalar_lea.vmem [#allocation11], %s1155_s15 }
  0x41   : > { %1303 = vset.pattern.permute.xlu2 %v502_v1  ;;  %1310 = vset.pattern.permute.xlu1 %v502_v1  ;;  %v676_v10 = vperm.slane %v1165_v8, 2  ;;  %v683_v11 = vperm.slane %v1165_v8, 3  ;;  %v472_v12 = vadd.f32 1.0, %v471_v5  ;;  %v476_v13 = vmax.f32 %v475_v6, 0.0  ;;  %v1820_v58 = vld [vmem:[#allocation7 + $0x2] ss:$0 sm:$0xff] }
  0x42   : > { %1309 = vset.pattern.permute.xlu0 %v502_v1  ;;  %464 = vmatpush.bf16.msra.mxu0 %v1191_v4  ;;  %v704_v30 = vperm.slane %v1165_v8, 6  ;;  %v711_v31 = vperm.slane %v1165_v8, 7  ;;  %v690_v35 = vperm.slane %v1165_v8, 4  ;;  %v697_v36 = vperm.slane %v1165_v8, 5  ;;  %s998_s19 = sshll.u32 %s2015_s21, 4  ;;  %s1000_s27 = sshll.u32 %s997_s16, 4  ;;  %s999_s19 = int_to_ptr.vmem [resolvable:$true] %s998_s19  ;;  %s1001_s27 = int_to_ptr.hbm [resolvable:$true] %s1000_s27 }
  0x43   : > { %v1304_v14 = vpack.i.bf16 %v683_v11, %v676_v10  ;;  %1332 = vlog2.f32 %v472_v12  ;;  %v477_v15 = vadd.f32 1.0, %v476_v13  ;;  %v662_v42 = vperm.slane %v1165_v8, 0  ;;  %v1835_v11 = vld [vmem:[%s2075_s3] ss:$0 sm:$0xff]  ;;  %s984_s30 = scalar_lea.sflag [#allocation4], %s1784_s24  ;;  %s1532_s14 = sshra.s32 %s1001_s27, 4  ;;  %s1533_s14 = int_to_ptr.hbm [resolvable:$true] %s1532_s14 }
  0x44   : > { %v1316_v33 = vpack.i.bf16 %v711_v31, %v704_v30  ;;  %v1311_v37 = vpack.i.bf16 %v697_v36, %v690_v35  ;;  %v669_v43 = vperm.slane %v1165_v8, 1  ;;  %s1534_s2 = scalar_lea.hbm %s1533_s14, 32  ;;  %s1538_s9 = scalar_lea.hbm %s2080_s8, 64 }
  0x45   : > { %1334 = vlog2.f32 %v477_v15  ;;  %1164 = vmatmul.msk.bf16.vlgmr.msra.gmra.mxu0 %vm453_vm1, %v432_v16  ;;  %p1535_p1 = scmp.ne.s32.totalorder %s1533_s14, %s1534_s2  ;;  %p1539_p11 = scmp.lt.s32.totalorder %s1533_s14, %s2080_s8 }
  0x46   : > { %v1321_v44 = vpack.i.bf16 %v669_v43, %v662_v42  ;;  %p1540_p12 = scmp.lt.s32.totalorder %s1538_s9, %s1534_s2 }
  0x47   : > { %p1536_p4 = pnand %p1535_p1, %p1752_p3 }
  0x48   : > { %p1541_p13 = por %p1540_p12, %p1539_p11 }
  0x49   : > { %1305 = vperm.xlu2 %1303, %v1304_v14   ;;  %v1333_v17 = vpop.eup %1332  ;;  %p1537_p8 = pneg %p1536_p4 }
  0x4a   : > { %v474_v18 = vmul.f32 0.6931472, %v1333_v17 }
  0x4b   : > { %v1335_v19 = vpop.eup %1334  ;;  %p1542_p0 = pnand %p1541_p13, %p1537_p8 }
  0x4c   : > { %v542_v20 = vperm.slane %v474_v18, 6  ;;  %v528_v21 = vperm.slane %v474_v18, 4  ;;  %v514_v22 = vperm.slane %v474_v18, 2  ;;  %v479_v23 = vmul.f32 0.6931472, %v1335_v19 }
  0x4d   : > { %v549_v25 = vperm.slane %v474_v18, 7  ;;  %v521_v26 = vperm.slane %v474_v18, 3  ;;  %v535_v29 = vperm.slane %v474_v18, 5  ;;  %v507_v40 = vperm.slane %v474_v18, 1 }
  0x4e   : > { %547 = vperm.xlu1 %1310, %v542_v20   ;;  %519 = vperm.xlu0 %1309, %v514_v22   ;;  %v603_v24 = vperm.slane %v479_v23, 2  ;;  %v610_v27 = vperm.slane %v479_v23, 3  ;;  %v631_v28 = vperm.slane %v479_v23, 6  ;;  %v624_v32 = vperm.slane %v479_v23, 5 }
  0x4f   : > { %v617_v34 = vperm.slane %v479_v23, 4  ;;  %v589_v38 = vperm.slane %v479_v23, 0  ;;  %v638_v39 = vperm.slane %v479_v23, 7  ;;  %v500_v41 = vperm.slane %v474_v18, 0 }
  0x50   : > { %v596_v45 = vperm.slane %v479_v23, 1 }
  0x51   : > { %533 = vperm.xlu2 %1303, %v528_v21  }
  0x56   : > { %608 = vperm.xlu1 %1310, %v603_v24   ;;  %526 = vperm.xlu0 %1309, %v521_v26   ;;  %v1194_v26 = vld [vmem:[#allocation10 + $0x8] sm:$0xff] }
  0x57   : > { %1196 = vmatpush.bf16.msra.mxu2 %v1194_v26  ;;  %1197 = vmatpush.bf16.msra.mxu3 %v1194_v26 }
  0x58   : > { %943 = vmatpush.bf16.msra.mxu1 %v1194_v26 }
  0x59   : > { %554 = vperm.xlu2 %1303, %v549_v25  }
  0x5e   : > { %615 = vperm.xlu1 %1310, %v610_v27   ;;  %540 = vperm.xlu0 %1309, %v535_v29  }
  0x61   : > { %636 = vperm.xlu2 %1303, %v631_v28  }
  0x66   : > { %629 = vperm.xlu1 %1310, %v624_v32   ;;  %622 = vperm.xlu0 %1309, %v617_v34  }
  0x69   : > { %1317 = vperm.xlu2 %1303, %v1316_v33   ;;  %v1193_v33 = vld [vmem:[#allocation10] sm:$0xff] }
  0x6a   : > { %1198 = vmatpush.bf16.msra.mxu2 %v1193_v33  ;;  %1199 = vmatpush.bf16.msra.mxu3 %v1193_v33 }
  0x6b   : > { %944 = vmatpush.bf16.msra.mxu1 %v1193_v33 }
  0x6e   : > { %1312 = vperm.xlu1 %1310, %v1311_v37   ;;  %643 = vperm.xlu0 %1309, %v638_v39  }
  0x71   : > { %594 = vperm.xlu2 %1303, %v589_v38  }
  0x76   : > { %512 = vperm.xlu1 %1310, %v507_v40   ;;  %505 = vperm.xlu0 %1309, %v500_v41  }
  0x7e   : > { %1322 = vperm.xlu1 %1310, %v1321_v44   ;;  %601 = vperm.xlu0 %1309, %v596_v45  }
  0xa3   : > { %v1306_v46 = vpop.permute.xlu2 %1305 }
  0xa4   : > { %v1307_v59 = vunpack.i.l.bf16 %v1306_v46  ;;  %v1308_v16 = vunpack.i.h.bf16 %v1306_v46 }
  0xa6   : > { %v721_v8 = vmul.f32 %v1820_v58, %v1307_v59  ;;  %v722_v27 = vmul.f32 %v1820_v58, %v1308_v16 }
  0xab   : > { %v1806_v47 = vpop.permute.xlu2 %533 }
  0xac   : > { %v561_v42 = vmul.f32 %v1813_v54, %v1806_v47 }
  0xb3   : > { %v1808_v48 = vpop.permute.xlu2 %554 }
  0xbb   : > { %v637_v49 = vpop.permute.xlu2 %636 }
  0xbc   : > { %v652_v9 = vmul.f32 %v1817_v56, %v637_v49 }
  0xc0   : > { %v548_v50 = vpop.permute.xlu1 %547  ;;  %v520_v51 = vpop.permute.xlu0 %519 }
  0xc1   : > { %v559_v62 = vmul.f32 %v1813_v54, %v520_v51  ;;  %v563_v2 = vmul.f32 %v1813_v54, %v548_v50  ;;  %v564_v50 = vmul.f32 %v1813_v54, %v1808_v48 }
  0xc2   : > { %v466_v53 = vpop.f32.mrf.mxu0 }
  0xc3   : > { %v1815_v55 = vadd.f32 %v1329_v52, %v466_v53  ;;  %v1826_v3 = vpop.permute.xlu2 %1317 }
  0xc4   : > { %v1319_v4 = vunpack.i.l.bf16 %v1826_v3  ;;  %v1320_v47 = vunpack.i.h.bf16 %v1826_v3 }
  0xc5   : > { %v494_v57 = vrot.slane %v1815_v55, 2  ;;  %v498_v61 = vrot.slane %v1815_v55, 6  ;;  %v495_v1 = vrot.slane %v1815_v55, 3  ;;  %v496_v36 = vrot.slane %v1815_v55, 4 }
  0xc6   : > { %v725_v17 = vmul.f32 %v1820_v58, %v1319_v4  ;;  %v497_v38 = vrot.slane %v1815_v55, 5  ;;  %v499_v40 = vrot.slane %v1815_v55, 7  ;;  %v565_v26 = vperm.slane %v1815_v55, 0 }
  0xc7   : > { %v567_v63 = vperm.slane %v494_v57, 0  ;;  %v571_v7 = vperm.slane %v498_v61, 0  ;;  %v568_v14 = vperm.slane %v495_v1, 0  ;;  %v569_v44 = vperm.slane %v496_v36, 0 }
  0xc8   : > { %v609_v60 = vpop.permute.xlu1 %608  ;;  %v527_v0 = vpop.permute.xlu0 %526  ;;  %v570_v49 = vperm.slane %v497_v38, 0  ;;  %v572_v51 = vperm.slane %v499_v40, 0 }
  0xc9   : > { %v583_v5 = vadd.f32 %v567_v63, %v559_v62  ;;  %v648_v6 = vmul.f32 %v1817_v56, %v609_v60  ;;  %v560_v13 = vmul.f32 %v1813_v54, %v527_v0  ;;  %v587_v15 = vadd.f32 %v571_v7, %v563_v2 }
  0xca   : > { %v468_v10 = vpop.f32.mrf.mxu0  ;;  %v585_v59 = vadd.f32 %v569_v44, %v561_v42  ;;  %v588_v2 = vadd.f32 %v572_v51, %v564_v50 }
  0xcb   : > { %v656_v12 = vadd.f32 %v648_v6, %v583_v5  ;;  %v660_v19 = vadd.f32 %v652_v9, %v587_v15  ;;  %v584_v22 = vadd.f32 %v568_v14, %v560_v13  ;;  %v726_v9 = vmul.f32 %v1820_v58, %v1320_v47 }
  0xcd   : > { %v729_v18 = vadd.f32 %v721_v8, %v656_v12  ;;  %v733_v25 = vadd.f32 %v725_v17, %v660_v19  ;;  %v595_v12 = vpop.permute.xlu2 %594 }
  0xcf   : > { %v1840_v21 = vadd.f32 %v1835_v11, %v729_v18  ;;  %v1846_v30 = vadd.f32 %v1835_v11, %v733_v25 }
  0xd0   : > { %v616_v20 = vpop.permute.xlu1 %615  ;;  %v541_v24 = vpop.permute.xlu0 %540 }
  0xd1   : > { %v649_v23 = vmul.f32 %v1817_v56, %v616_v20  ;;  %v1168_v28 = vmul.f32 -1.442695, %v1840_v21  ;;  %v1172_v32 = vmul.f32 -1.442695, %v1846_v30  ;;  %v562_v46 = vmul.f32 %v1813_v54, %v541_v24 }
  0xd2   : > { %v493_v20 = vrot.slane %v1815_v55, 1 }
  0xd3   : > { %v657_v29 = vadd.f32 %v649_v23, %v584_v22  ;;  %1336 = vpow2.f32 %v1168_v28  ;;  %v586_v62 = vadd.f32 %v570_v49, %v562_v46  ;;  %v646_v23 = vmul.f32 %v1817_v56, %v595_v12 }
  0xd4   : > { %1338 = vpow2.f32 %v1172_v32  ;;  %v566_v49 = vperm.slane %v493_v20, 0 }
  0xd5   : > { %v730_v31 = vadd.f32 %v722_v27, %v657_v29 }
  0xd7   : > { %v1850_v34 = vadd.f32 %v1835_v11, %v730_v31 }
  0xd8   : > { %v630_v35 = vpop.permute.xlu1 %629  ;;  %v623_v39 = vpop.permute.xlu0 %622 }
  0xd9   : > { %v1169_v37 = vmul.f32 -1.442695, %v1850_v34  ;;  %v1337_v41 = vpop.eup %1336  ;;  %v651_v52 = vmul.f32 %v1817_v56, %v630_v35  ;;  %v650_v53 = vmul.f32 %v1817_v56, %v623_v39 }
  0xda   : > { %v1858_v43 = vadd.f32 1.0, %v1337_v41  ;;  %v1339_v45 = vpop.eup %1338 }
  0xdb   : > { %1340 = vpow2.f32 %v1169_v37  ;;  %v1866_v57 = vadd.f32 1.0, %v1339_v45  ;;  %v659_v5 = vadd.f32 %v651_v52, %v586_v62  ;;  %v658_v6 = vadd.f32 %v650_v53, %v585_v59 }
  0xdc   : > { %1342 = vrcp.f32 %v1858_v43  ;;  %v817_v33 = vand.u32 2147483647, %v1858_v43  ;;  %v819_v38 = vand.u32 2147483648, %v1858_v43  ;;  %vm813_vm3 = vweird.f32 %v1858_v43 }
  0xdd   : > { %1344 = vrcp.f32 %v1866_v57  ;;  %vm873_vm11 = vweird.f32 %v1866_v57 }
  0xde   : > { %vm1915_vm5 = vcmp.eq.f32.partialorder %v817_v33, 8.507059e+37  ;;  %v820_v52 = vor.u32 1.1754944e-38, %v819_v38 }
  0xe0   : > { %v1313_v60 = vpop.permute.xlu1 %1312  ;;  %v644_v1 = vpop.permute.xlu0 %643 }
  0xe1   : > { %v1341_v61 = vpop.eup %1340  ;;  %v1315_v63 = vunpack.i.h.bf16 %v1313_v60  ;;  %v1314_v0 = vunpack.i.l.bf16 %v1313_v60  ;;  %v653_v4 = vmul.f32 %v1817_v56, %v644_v1 }
  0xe2   : > { %v1870_v48 = vadd.f32 1.0, %v1341_v61  ;;  %v1875_v8 = vpop.eup %1342 }
  0xe3   : > { %v724_v7 = vmul.f32 %v1820_v58, %v1315_v63  ;;  %v723_v3 = vmul.f32 %v1820_v58, %v1314_v0  ;;  %v661_v10 = vadd.f32 %v653_v4, %v588_v2  ;;  %v809_v15 = vmul.f32 %v1875_v8, %v1858_v43  ;;  %v1881_v17 = vpop.eup %1344 }
  0xe4   : > { %1346 = vrcp.f32 %v1870_v48  ;;  %v869_v27 = vmul.f32 %v1881_v17, %v1866_v57  ;;  %vm814_vm2 = vweird.f32 %v1875_v8  ;;  %v832_v42 = vand.u32 2147483647, %v1870_v48 }
  0xe5   : > { %v731_v13 = vadd.f32 %v723_v3, %v658_v6  ;;  %v732_v14 = vadd.f32 %v724_v7, %v659_v5  ;;  %v734_v16 = vadd.f32 %v726_v9, %v661_v10  ;;  %v810_v22 = vsub.f32 1.0, %v809_v15  ;;  %vm1911_vm4 = vmor %vm813_vm3, %vm814_vm2 }
  0xe6   : > { %v870_v55 = vsub.f32 1.0, %v869_v27  ;;  %v834_v44 = vand.u32 2147483648, %v1870_v48  ;;  %vm828_vm6 = vweird.f32 %v1870_v48  ;;  %vm1924_vm8 = vcmp.eq.f32.partialorder %v832_v42, 8.507059e+37 }
  0xe7   : > { %v1884_v18 = vadd.f32 %v1835_v11, %v731_v13  ;;  %v1887_v19 = vadd.f32 %v1835_v11, %v732_v14  ;;  %v1892_v24 = vadd.f32 %v1835_v11, %v734_v16  ;;  %v811_v32 = vmul.f32 %v1875_v8, %v810_v22 }
  0xe8   : > { %v513_v25 = vpop.permute.xlu1 %512  ;;  %v506_v31 = vpop.permute.xlu0 %505  ;;  %v835_v61 = vor.u32 1.1754944e-38, %v834_v44  ;;  %vm874_vm9 = vweird.f32 %v1881_v17  ;;  %v877_v27 = vand.u32 2147483647, %v1866_v57 }
  0xe9   : > { %v1170_v28 = vmul.f32 -1.442695, %v1884_v18  ;;  %v1171_v29 = vmul.f32 -1.442695, %v1887_v19  ;;  %v1173_v36 = vmul.f32 -1.442695, %v1892_v24  ;;  %v557_v37 = vmul.f32 %v1813_v54, %v506_v31  ;;  %vm1962_vm12 = vmor %vm873_vm11, %vm874_vm9 }
  0xea   : > { %v1347_v35 = vpop.eup %1346  ;;  %v812_v39 = vadd.f32 %v1875_v8, %v811_v32  ;;  %v558_v41 = vmul.f32 %v1813_v54, %v513_v25  ;;  %v871_v54 = vmul.f32 %v1881_v17, %v870_v55  ;;  %vm878_vm13 = vcmp.eq.f32.partialorder %v877_v27, 8.507059e+37 }
  0xeb   : > { %1348 = vpow2.f32 %v1170_v28  ;;  %v824_v40 = vmul.f32 %v1347_v35, %v1870_v48  ;;  %v581_v45 = vadd.f32 %v565_v26, %v557_v37  ;;  %vm829_vm7 = vweird.f32 %v1347_v35 }
  0xec   : > { %1350 = vpow2.f32 %v1171_v29  ;;  %v816_v53 = vsel %vm1911_vm4, %v1875_v8, %v812_v39  ;;  %v582_v43 = vadd.f32 %v566_v49, %v558_v41  ;;  %vm830_vm10 = vmor %vm828_vm6, %vm829_vm7  ;;  %v872_v8 = vadd.f32 %v1881_v17, %v871_v54 }
  0xed   : > { %1352 = vpow2.f32 %v1173_v36  ;;  %v825_v46 = vsub.f32 1.0, %v824_v40  ;;  %v654_v63 = vadd.f32 %v646_v23, %v581_v45  ;;  %v821_v3 = vsel %vm1915_vm5, %v820_v52, %v816_v53 }
  0xee   : > { %v900_v20 = vmul.f32 %v821_v3, %v1840_v21  ;;  %v876_v29 = vsel %vm1962_vm12, %v1881_v17, %v872_v8 }
  0xef   : > { %v826_v47 = vmul.f32 %v1347_v35, %v825_v46 }
  0xf0   : > { %v1323_v59 = vpop.permute.xlu1 %1322  ;;  %v602_v2 = vpop.permute.xlu0 %601 }
  0xf1   : > { %v1349_v62 = vpop.eup %1348  ;;  %v1325_v0 = vunpack.i.h.bf16 %v1323_v59  ;;  %v1324_v1 = vunpack.i.l.bf16 %v1323_v59  ;;  %v827_v4 = vadd.f32 %v1347_v35, %v826_v47  ;;  %v647_v7 = vmul.f32 %v1817_v56, %v602_v2 }
  0xf2   : > { %v1351_v5 = vpop.eup %1350  ;;  %v1929_v6 = vadd.f32 1.0, %v1349_v62 }
  0xf3   : > { %v1353_v9 = vpop.eup %1352  ;;  %v1938_v10 = vadd.f32 1.0, %v1351_v5  ;;  %v720_v12 = vmul.f32 %v1820_v58, %v1325_v0  ;;  %v719_v13 = vmul.f32 %v1820_v58, %v1324_v1  ;;  %v831_v14 = vsel %vm830_vm10, %v1347_v35, %v827_v4 }
  0xf4   : > { %1354 = vrcp.f32 %v1929_v6  ;;  %v1943_v56 = vadd.f32 1.0, %v1353_v9  ;;  %v655_v15 = vadd.f32 %v647_v7, %v582_v43  ;;  %v836_v16 = vsel %vm1924_vm8, %v835_v61, %v831_v14 }
  0xf5   : > { %1356 = vrcp.f32 %v1938_v10  ;;  %v727_v48 = vadd.f32 %v719_v13, %v654_v63  ;;  %v901_v22 = vmul.f32 %v836_v16, %v1850_v34  ;;  %v879_v58 = vand.u32 2147483648, %v1866_v57 }
  0xf6   : > { %1358 = vrcp.f32 %v1943_v56  ;;  %v728_v23 = vadd.f32 %v720_v12, %v655_v15  ;;  %v849_v37 = vand.u32 2147483648, %v1929_v6  ;;  %vm843_vm14 = vweird.f32 %v1929_v6 }
  0xf7   : > { %v1953_v25 = vadd.f32 %v1835_v11, %v727_v48  ;;  %v907_v26 = vpack.c.bf16 %v901_v22, %v900_v20  ;;  %v880_v32 = vor.u32 1.1754944e-38, %v879_v58  ;;  %v862_v17 = vand.u32 2147483647, %v1938_v10 }
  0xf8   : > { %v1958_v28 = vadd.f32 %v1835_v11, %v728_v23  ;;  %v847_v11 = vand.u32 2147483647, %v1929_v6  ;;  %vm858_vm0 = vweird.f32 %v1938_v10  ;;  %v864_v44 = vand.u32 2147483648, %v1938_v10 }
  0xf9   : > { %v1166_v34 = vmul.f32 -1.442695, %v1953_v25  ;;  %1183 = vmatmul.msk.bf16.vlgmr.msra.gmra.mxu2 %vm453_vm1, %v907_v26  ;;  %v881_v55 = vsel %vm878_vm13, %v880_v32, %v876_v29  ;;  %v892_v49 = vand.u32 2147483647, %v1943_v56  ;;  %v850_v50 = vor.u32 1.1754944e-38, %v849_v37 }
  0xfa   : > { %v1355_v31 = vpop.eup %1354  ;;  %v1167_v57 = vmul.f32 -1.442695, %v1958_v28  ;;  %vm1979_vm15 = vcmp.eq.f32.partialorder %v847_v11, 8.507059e+37  ;;  %v894_v52 = vand.u32 2147483648, %v1943_v56  ;;  %vm1987_vm4 = vcmp.eq.f32.partialorder %v862_v17, 8.507059e+37 }
  0xfb   : > { %v1357_v33 = vpop.eup %1356  ;;  %1360 = vpow2.f32 %v1166_v34  ;;  %v839_v35 = vmul.f32 %v1355_v31, %v1929_v6  ;;  %vm844_vm2 = vweird.f32 %v1355_v31  ;;  %v865_v62 = vor.u32 1.1754944e-38, %v864_v44 }
  0xfc   : > { %v1359_v36 = vpop.eup %1358  ;;  %1362 = vpow2.f32 %v1167_v57  ;;  %v854_v38 = vmul.f32 %v1357_v33, %v1938_v10  ;;  %vm859_vm3 = vweird.f32 %v1357_v33  ;;  %vm845_vm6 = vmor %vm843_vm14, %vm844_vm2  ;;  %vm888_vm7 = vweird.f32 %v1943_v56 }
  0xfd   : > { %v840_v39 = vsub.f32 1.0, %v839_v35  ;;  %v884_v40 = vmul.f32 %v1359_v36, %v1943_v56  ;;  %vm889_vm5 = vweird.f32 %v1359_v36  ;;  %vm860_vm8 = vmor %vm858_vm0, %vm859_vm3  ;;  %vm893_vm9 = vcmp.eq.f32.partialorder %v892_v49, 8.507059e+37 }
  0xfe   : > { %v855_v42 = vsub.f32 1.0, %v854_v38  ;;  %vm890_vm10 = vmor %vm888_vm7, %vm889_vm5  ;;  %v895_v5 = vor.u32 1.1754944e-38, %v894_v52  ;;  %v904_v10 = vmul.f32 %v881_v55, %v1846_v30 }
  0xff   : > { %v841_v45 = vmul.f32 %v1355_v31, %v840_v39  ;;  %v885_v46 = vsub.f32 1.0, %v884_v40 }
 0x100   : > { %v856_v51 = vmul.f32 %v1357_v33, %v855_v42 }
 0x101   : > { %v1361_v54 = vpop.eup %1360  ;;  %v842_v53 = vadd.f32 %v1355_v31, %v841_v45  ;;  %v886_v43 = vmul.f32 %v1359_v36, %v885_v46 }
 0x102   : > { %v1363_v59 = vpop.eup %1362  ;;  %v770_v60 = vadd.f32 1.0, %v1361_v54  ;;  %v857_v61 = vadd.f32 %v1357_v33, %v856_v51 }
 0x103   : > { %v771_v63 = vadd.f32 1.0, %v1363_v59  ;;  %v846_v0 = vsel %vm845_vm6, %v1355_v31, %v842_v53  ;;  %v887_v1 = vadd.f32 %v1359_v36, %v886_v43 }
 0x104   : > { %1364 = vrcp.f32 %v770_v60  ;;  %v851_v2 = vsel %vm1979_vm15, %v850_v50, %v846_v0  ;;  %v861_v4 = vsel %vm860_vm8, %v1357_v33, %v857_v61  ;;  %vm783_vm13 = vweird.f32 %v770_v60 }
 0x105   : > { %1366 = vrcp.f32 %v771_v63  ;;  %v866_v6 = vsel %vm1987_vm4, %v865_v62, %v861_v4  ;;  %v902_v7 = vmul.f32 %v851_v2, %v1884_v18  ;;  %v891_v3 = vsel %vm890_vm10, %v1359_v36, %v887_v1  ;;  %v1331_v36 = vld [vmem:[%s2079_s7] ss:$0 sm:$0xff] }
 0x106   : > { %v903_v8 = vmul.f32 %v866_v6, %v1887_v19  ;;  %v896_v9 = vsel %vm893_vm9, %v895_v5, %v891_v3  ;;  %v789_v18 = vand.u32 2147483648, %v770_v60  ;;  %v787_v19 = vand.u32 2147483647, %v770_v60 }
 0x107   : > { %v905_v12 = vmul.f32 %v896_v9, %v1892_v24  ;;  %v804_v58 = vand.u32 2147483648, %v771_v63  ;;  %v802_v24 = vand.u32 2147483647, %v771_v63  ;;  %vm798_vm15 = vweird.f32 %v771_v63 }
 0x108   : > { %v908_v13 = vpack.c.bf16 %v903_v8, %v902_v7  ;;  %v790_v27 = vor.u32 1.1754944e-38, %v789_v18  ;;  %vm788_vm0 = vcmp.eq.f32.partialorder %v787_v19, 8.507059e+37  ;;  %vm974_vm4 = vcmask 257024  }
 0x109   : > { %v909_v14 = vpack.c.bf16 %v905_v12, %v904_v10  ;;  %v805_v29 = vor.u32 1.1754944e-38, %v804_v58  ;;  %vm803_vm3 = vcmp.eq.f32.partialorder %v802_v24, 8.507059e+37 }
 0x10a   : > { %v1365_v56 = vpop.eup %1364  ;;  %1184 = vmatmul.msk.bf16.gmra.mxu2 %vm453_vm1, %v908_v13 }
 0x10b   : > { %v1367_v15 = vpop.eup %1366  ;;  %1185 = vmatmul.msk.bf16.vlgmr.msra.gmra.mxu3 %vm453_vm1, %v909_v14  ;;  %v779_v16 = vmul.f32 %v1365_v56, %v770_v60  ;;  %vm784_vm11 = vweird.f32 %v1365_v56 }
 0x10c   : > { %v794_v48 = vmul.f32 %v1367_v15, %v771_v63  ;;  %vm799_vm12 = vweird.f32 %v1367_v15  ;;  %vm785_vm14 = vmor %vm783_vm13, %vm784_vm11 }
 0x10d   : > { %v780_v20 = vsub.f32 1.0, %v779_v16  ;;  %vm800_vm2 = vmor %vm798_vm15, %vm799_vm12 }
 0x10e   : > { %v795_v22 = vsub.f32 1.0, %v794_v48 }
 0x10f   : > { %v781_v23 = vmul.f32 %v1365_v56, %v780_v20 }
 0x110   : > { %v796_v30 = vmul.f32 %v1367_v15, %v795_v22 }
 0x111   : > { %v782_v26 = vadd.f32 %v1365_v56, %v781_v23 }
 0x112   : > { %v797_v21 = vadd.f32 %v1367_v15, %v796_v30 }
 0x113   : > { %v786_v34 = vsel %vm785_vm14, %v1365_v56, %v782_v26 }
 0x114   : > { %v791_v31 = vsel %vm788_vm0, %v790_v27, %v786_v34  ;;  %v801_v57 = vsel %vm800_vm2, %v1367_v15, %v797_v21 }
 0x115   : > { %v806_v11 = vsel %vm803_vm3, %v805_v29, %v801_v57  ;;  %v898_v32 = vmul.f32 %v791_v31, %v1953_v25 }
 0x116   : > { %v899_v33 = vmul.f32 %v806_v11, %v1958_v28 }
 0x118   : > { %v906_v35 = vpack.c.bf16 %v899_v33, %v898_v32 }
 0x11a   : > { %1182 = vmatmul.msk.bf16.vlgmr.msra.gmra.mxu1 %vm453_vm1, %v906_v35 }
 0x17c   : > { %v951_v37 = vpop.f32.mrf.mxu2 }
 0x17d   : > { %v952_v38 = vadd.f32 %v1331_v36, %v951_v37 }
 0x17f   : > { %v968_v55 = vpack.c.bf16 %v952_v38, %v952_v38 }
 0x181   : > { %977 = vst.msk [vmem:[%s2015_s21 + $0x8] sm:$0xf] %vm974_vm4, %v968_v55 }
 0x184   : > { %v953_v25 = vpop.f32.mrf.mxu2 }
 0x185   : > { %v954_v28 = vadd.f32 %v1331_v36, %v953_v25 }
 0x187   : > { %v969_v39 = vpack.c.bf16 %v954_v28, %v954_v28 }
 0x189   : > { %978 = vst.msk [vmem:[%s2015_s21 + $0xc] sm:$0xf] %vm974_vm4, %v969_v39 }
 0x18d   : > { %v956_v17 = vpop.f32.mrf.mxu2 }
 0x18e   : > { %v957_v40 = vadd.f32 %v1331_v36, %v956_v17  ;;  %v961_v41 = vpop.f32.mrf.mxu3 }
 0x18f   : > { %v962_v42 = vadd.f32 %v1331_v36, %v961_v41 }
 0x190   : > { %v970_v44 = vpack.c.bf16 %v957_v40, %v957_v40 }
 0x191   : > { %v972_v45 = vpack.c.bf16 %v962_v42, %v962_v42 }
 0x192   : > { %979 = vst.msk [vmem:[%s2015_s21 + $0x10] sm:$0xf] %vm974_vm4, %v970_v44 }
 0x193   : > { %981 = vst.msk [vmem:[%s2015_s21 + $0x18] sm:$0xf] %vm974_vm4, %v972_v45 }
 0x195   : > { %v958_v46 = vpop.f32.mrf.mxu2 }
 0x196   : > { %v959_v49 = vadd.f32 %v1331_v36, %v958_v46  ;;  %v963_v50 = vpop.f32.mrf.mxu3 }
 0x197   : > { %v964_v51 = vadd.f32 %v1331_v36, %v963_v50  ;;  %v946_v52 = vpop.f32.mrf.mxu1 }
 0x198   : > { %v971_v54 = vpack.c.bf16 %v959_v49, %v959_v49  ;;  %v947_v53 = vadd.f32 %v1331_v36, %v946_v52 }
 0x199   : > { %v973_v47 = vpack.c.bf16 %v964_v51, %v964_v51 }
 0x19a   : > { %980 = vst.msk [vmem:[%s2015_s21 + $0x14] sm:$0xf] %vm974_vm4, %v971_v54  ;;  %v966_v43 = vpack.c.bf16 %v947_v53, %v947_v53 }
 0x19b   : > { %982 = vst.msk [vmem:[%s2015_s21 + $0x1c] sm:$0xf] %vm974_vm4, %v973_v47 }
 0x19c   : > { %975 = vst.msk [vmem:[%s2015_s21] sm:$0xf] %vm974_vm4, %v966_v43 }
 0x19f   : > { %v948_v59 = vpop.f32.mrf.mxu1 }
 0x1a0   : > { %v949_v60 = vadd.f32 %v1331_v36, %v948_v59 }
 0x1a2   : > { %v967_v61 = vpack.c.bf16 %v949_v60, %v949_v60 }
 0x1a4   : > { %976 = vst.msk [vmem:[%s2015_s21 + $0x4] sm:$0xf] %vm974_vm4, %v967_v61 }
 0x1a5   : > { %1545 = shalt.err (!%p1542_p0)
}
 0x1a6   : > { %s1620_s24 = smov 64   ;;  %s1621_s18 = smov 4  }
 0x1a7   : > { %1216 = dma.vmem_to_hbm [thread:$0]  (%p1752_p3), %s999_s19, 512, %s1001_s27, %s984_s30, %s1620_s24, %s1620_s24, %s1621_s18  }
 0x1a8 PF: > { %s2114_s20 = sld [smem:[#allocation17_spill]]  ;;  %p1236_p5 = pnand %p1144_p9, %p1712_p6 }
 0x1aa   : > { %p1237_p7 = pneg %p1236_p5 }
 0x1ae   : > { %s1015_s12 = sand.u32 1, %s2114_s20  }
 0x1af   : > { %s1016_s15 = scalar_lea.sflag [#allocation4], %s1015_s12 }
 0x1b0   : > { %1587 = dma.done.wait (%p1237_p7), %s1016_s15, 512  }
 0x1b1   : > { %1589 = vsyncadd (%p1237_p7), %s1016_s15, 4294966784  ;;  %s28_s10 = sadd.s32 1, %s1612_s10   ;;  %s2116_s21 = sld [smem:[#allocation21_spill]] }
 0x1b2   : > { %p25_p10 = scmp.ge.s32.totalorder %s28_s10, 4   ;;  %s2117_s30 = sld [smem:[#allocation18_spill]] }
 0x1b3   : > { %s2118_s9 = sld [smem:[#allocation20_spill]]  ;;  %s2119_s27 = smov %s1596_s28 }
 0x1b4   : > { %s2120_s28 = smov %s1600_s29  ;;  %27 = sbr.rel (!%p25_p10) target bundleno = 13 (0xd), region = 122 }
 0x1b7   : > { %s2121_s29 = smov %s2116_s21 }
 0x1b9   :  { %1022 = vsyncpa [#allocation3], 1 }
 0x1ba   :  { %1024 = vsyncpa [#allocation3 + $0x1], 1 }
 0x1bb   :  { %1025 = vsyncpa [#allocation6], 1 }
 0x1bc   :  { %1027 = vsyncpa [#allocation6 + $0x1], 1 }
 0x1bd   :  { %1028 = vsyncpa [#allocation9], 1 }
 0x1be   :  { %1029 = vsyncpa [#allocation4], 1 }
 0x1bf   :  { %1031 = vsyncpa [#allocation4 + $0x1], 1 }

</bundles_post_ra>
